<compile_context>
chip_gen: v5e
topology: v5e:2x2
jax: 0.10.0
libtpu: 0.0.40
codegen_flags: <defaults>
</compile_context>

<pallas_src>
import functools
import math

import jax
import jax.numpy as jnp
from jax import lax
from jax.experimental import pallas as pl
from jax.experimental.pallas import tpu as pltpu

_LN_EPS = 0.001
_VMEM_LIMIT = 32 * 1024 * 1024  # scoped default; safe on v5e/v6e/v7x


def _layer_norm_rows(z, gamma, beta, *, eps, d):
    """torch.std semantics: unbiased (ddof=1), eps added to sigma (not sigma^2)."""
    mu = jnp.mean(z, axis=-1, keepdims=True)
    diff = z - mu
    sigma = jnp.sqrt(jnp.sum(diff * diff, axis=-1, keepdims=True) / (d - 1))
    return diff / (sigma + eps) * gamma + beta


# ---------------------------------------------------------------------------
# Fused encoder-layer kernel: one grid step == one batch element.
# ---------------------------------------------------------------------------
def _encoder_layer_kernel(x_ref, wqkv_ref, projw_ref, projb_ref,
                          ln1g_ref, ln1b_ref,
                          w1_ref, b1_ref, w2_ref, b2_ref,
                          ln2g_ref, ln2b_ref,
                          o_ref, attn_ref,
                          *, n_head, d_k, d_v, d_model, scale, eps, apply_ln):
    x = x_ref[0].astype(jnp.float32)                       # (seq, d_model)
    seq = x.shape[0]

    # ---- fused QKV projection: single lane-dense MXU matmul -----------------
    qkv = jnp.dot(x, wqkv_ref[...], preferred_element_type=jnp.float32)
    hk = n_head * d_k
    q_all = qkv[:, :hk]                                    # (seq, n_head*d_k)
    k_all = qkv[:, hk:2 * hk]
    v_all = qkv[:, 2 * hk:2 * hk + n_head * d_v]

    # ---- per-head scaled dot-product attention, folded into the projection --
    proj_acc = jnp.zeros((seq, d_model), jnp.float32)
    for h in range(n_head):                                # static unroll
        q = q_all[:, h * d_k:(h + 1) * d_k]
        k = k_all[:, h * d_k:(h + 1) * d_k]
        v = v_all[:, h * d_v:(h + 1) * d_v]
        # q @ k^T, contracting dim 1 of both operands (no HBM transpose; the
        # tiny in-VMEM K transpose rides the otherwise-idle XLU slot).
        s = lax.dot_general(q, k, (((1,), (1,)), ((), ())),
                            preferred_element_type=jnp.float32) * scale
        s_max = jnp.max(s, axis=-1, keepdims=True)
        p = jnp.exp(s - s_max)
        attn = p / jnp.sum(p, axis=-1, keepdims=True)      # exact div: parity @1e-4
        attn_ref[h, 0] = attn.astype(attn_ref.dtype)
        ctx_h = jnp.dot(attn, v, preferred_element_type=jnp.float32)
        # Fold the per-head output-projection slice directly: this replaces the
        # torch.cat(torch.split(...)) concat + big matmul with an accumulation.
        proj_acc += jnp.dot(ctx_h, projw_ref[h * d_v:(h + 1) * d_v, :],
                            preferred_element_type=jnp.float32)
    proj = proj_acc + projb_ref[...]

    # ---- residual + LayerNormalization (skipped when seq == 1, like torch) --
    z1 = proj + x
    if apply_ln:
        z1 = _layer_norm_rows(z1, ln1g_ref[...], ln1b_ref[...], eps=eps, d=d_model)

    # ---- PositionwiseFeedForward (Conv1d k=1 == per-position Linear) --------
    h1 = jnp.dot(z1, w1_ref[...], preferred_element_type=jnp.float32) + b1_ref[...]
    h1 = jnp.maximum(h1, 0.0)
    ff = jnp.dot(h1, w2_ref[...], preferred_element_type=jnp.float32) + b2_ref[...]

    z2 = ff + z1
    if apply_ln:
        z2 = _layer_norm_rows(z2, ln2g_ref[...], ln2b_ref[...], eps=eps, d=d_model)
    o_ref[0] = z2.astype(o_ref.dtype)


# ---------------------------------------------------------------------------
# EncoderLayer forward (single pallas_call)
# ---------------------------------------------------------------------------
@functools.partial(jax.jit, static_argnames=("n_head", "d_k", "d_v"))
def encoder_layer_forward(enc_input, params, *, n_head, d_k, d_v):
    mb, seq, d_model = enc_input.shape
    d_inner = params["w1"].shape[1]
    qkv_cols = 2 * n_head * d_k + n_head * d_v
    scale = 1.0 / math.sqrt(d_model)          # ScaledDotProductAttention temper

    kernel = functools.partial(
        _encoder_layer_kernel,
        n_head=n_head, d_k=d_k, d_v=d_v, d_model=d_model,
        scale=scale, eps=_LN_EPS, apply_ln=(seq != 1))

    flops = (2 * mb * seq * d_model * qkv_cols                    # QKV
             + 2 * mb * n_head * seq * seq * (d_k + d_v)          # scores + ctx
             + 2 * mb * seq * n_head * d_v * d_model              # proj
             + 4 * mb * seq * d_model * d_inner)                  # FFN
    bytes_accessed = 4 * (2 * mb * seq * d_model + n_head * mb * seq * seq
                          + d_model * qkv_cols + n_head * d_v * d_model
                          + 2 * d_model * d_inner + 6 * d_model + d_inner)

    out, attn = pl.pallas_call(
        kernel,
        out_shape=(
            jax.ShapeDtypeStruct((mb, seq, d_model), enc_input.dtype),
            jax.ShapeDtypeStruct((n_head, mb, seq, seq), enc_input.dtype),
        ),
        grid=(mb,),
        in_specs=[
            pl.BlockSpec((1, seq, d_model), lambda b: (b, 0, 0)),        # x
            pl.BlockSpec((d_model, qkv_cols), lambda b: (0, 0)),         # wqkv
            pl.BlockSpec((n_head * d_v, d_model), lambda b: (0, 0)),     # proj_w
            pl.BlockSpec((1, d_model), lambda b: (0, 0)),                # proj_b
            pl.BlockSpec((1, d_model), lambda b: (0, 0)),                # ln1 gamma
            pl.BlockSpec((1, d_model), lambda b: (0, 0)),                # ln1 beta
            pl.BlockSpec((d_model, d_inner), lambda b: (0, 0)),          # w1
            pl.BlockSpec((1, d_inner), lambda b: (0, 0)),                # b1
            pl.BlockSpec((d_inner, d_model), lambda b: (0, 0)),          # w2
            pl.BlockSpec((1, d_model), lambda b: (0, 0)),                # b2
            pl.BlockSpec((1, d_model), lambda b: (0, 0)),                # ln2 gamma
            pl.BlockSpec((1, d_model), lambda b: (0, 0)),                # ln2 beta
        ],
        out_specs=(
            pl.BlockSpec((1, seq, d_model), lambda b: (b, 0, 0)),
            pl.BlockSpec((n_head, 1, seq, seq), lambda b: (0, b, 0, 0)),
        ),
        compiler_params=pltpu.CompilerParams(
            dimension_semantics=("parallel",),       # >=2 blocks for megacore
            vmem_limit_bytes=_VMEM_LIMIT,
        ),
        cost_estimate=pl.CostEstimate(
            flops=int(flops),
            transcendentals=int(mb * n_head * seq * seq),
            bytes_accessed=int(bytes_accessed)),
    )(enc_input,
      params["wqkv"], params["proj_w"], params["proj_b"],
      params["ln_attn_g"], params["ln_attn_b"],
      params["w1"], params["b1"], params["w2"], params["b2"],
      params["ln_ffn_g"], params["ln_ffn_b"])

    # (n_head, mb, seq, seq) -> (n_head*mb, seq, seq): contiguous view, same
    # head-major ordering torch produces via repeat(n_head,1,1).view(...).
    attns = attn.reshape(n_head * mb, seq, seq)
    return out, attns


# ---------------------------------------------------------------------------
# Parameter init (deterministic, mirroring the torch module's init style;
# weights stored pre-transposed / pre-folded in (in, out) layout; the QKV
# weights are concatenated once here so the forward pass never re-packs them).
# ---------------------------------------------------------------------------
def init_encoder_layer_params(key, d_model, d_inner, n_head, d_k, d_v,
                              dtype=jnp.float32):
    ks = jax.random.split(key, 9)

    def xavier(k, fan_in, fan_out, shape):
        std = math.sqrt(2.0 / (fan_in + fan_out))
        return std * jax.random.normal(k, shape, dtype=dtype)

    def uniform(k, bound, shape):
        return jax.random.uniform(k, shape, dtype=dtype,
                                  minval=-bound, maxval=bound)

    wq = xavier(ks[0], d_model, d_k, (d_model, n_head * d_k))
    wk = xavier(ks[1], d_model, d_k, (d_model, n_head * d_k))
    wv = xavier(ks[2], d_model, d_v, (d_model, n_head * d_v))
    return {
        "wqkv": jnp.concatenate([wq, wk, wv], axis=1),   # (d_model, q|k|v cols)
        "proj_w": xavier(ks[3], n_head * d_v, d_model, (n_head * d_v, d_model)),
        "proj_b": uniform(ks[4], 1.0 / math.sqrt(n_head * d_v), (1, d_model)),
        "ln_attn_g": jnp.ones((1, d_model), dtype),
        "ln_attn_b": jnp.zeros((1, d_model), dtype),
        "w1": uniform(ks[5], 1.0 / math.sqrt(d_model), (d_model, d_inner)),
        "b1": uniform(ks[6], 1.0 / math.sqrt(d_model), (1, d_inner)),
        "w2": uniform(ks[7], 1.0 / math.sqrt(d_inner), (d_inner, d_model)),
        "b2": uniform(ks[8], 1.0 / math.sqrt(d_inner), (1, d_model)),
        "ln_ffn_g": jnp.ones((1, d_model), dtype),
        "ln_ffn_b": jnp.zeros((1, d_model), dtype),
    }


# ---------------------------------------------------------------------------
# Pure-JAX reference (same math as the torch module, eval mode)
# ---------------------------------------------------------------------------
def encoder_layer_reference(enc_input, params, *, n_head, d_k, d_v):
    mb, seq, d_model = enc_input.shape
    x2d = enc_input.reshape(mb * seq, d_model)
    hk = n_head * d_k
    wq = params["wqkv"][:, :hk]
    wk = params["wqkv"][:, hk:2 * hk]
    wv = params["wqkv"][:, 2 * hk:]

    def split_heads(x, dh):
        x = x.reshape(mb, seq, n_head, dh)
        return jnp.transpose(x, (2, 0, 1, 3)).reshape(n_head * mb, seq, dh)

    q_s = split_heads(x2d @ wq, d_k)
    k_s = split_heads(x2d @ wk, d_k)
    v_s = split_heads(x2d @ wv, d_v)

    scores = jnp.einsum("bqd,bkd->bqk", q_s, k_s) / math.sqrt(d_model)
    attn = jax.nn.softmax(scores, axis=-1)
    ctx = jnp.einsum("bqk,bkd->bqd", attn, v_s)

    concat = jnp.transpose(ctx.reshape(n_head, mb, seq, d_v),
                           (1, 2, 0, 3)).reshape(mb * seq, n_head * d_v)
    proj = concat @ params["proj_w"] + params["proj_b"][0]

    def layer_norm(z, g, b):
        if seq == 1:
            return z
        mu = jnp.mean(z, axis=-1, keepdims=True)
        sigma = jnp.std(z, axis=-1, keepdims=True, ddof=1)
        return (z - mu) / (sigma + _LN_EPS) * g[0] + b[0]

    attn_ln = layer_norm(proj + x2d, params["ln_attn_g"], params["ln_attn_b"])
    h = jax.nn.relu(attn_ln @ params["w1"] + params["b1"][0])
    ff = h @ params["w2"] + params["b2"][0]
    out2d = layer_norm(ff + attn_ln, params["ln_ffn_g"], params["ln_ffn_b"])
    return out2d.reshape(mb, seq, d_model), attn


if __name__ == "__main__":
    mb, seq = 2, 8
    d_model, d_inner, n_head, d_k, d_v = 32, 64, 4, 32, 32

    key = jax.random.PRNGKey(0)
    pkey, xkey = jax.random.split(key)
    params = init_encoder_layer_params(pkey, d_model, d_inner, n_head, d_k, d_v)
    x = jax.random.normal(xkey, (mb, seq, d_model), dtype=jnp.float32)

    enc_out, attns = encoder_layer_forward(x, params,
                                           n_head=n_head, d_k=d_k, d_v=d_v)
    enc_out = jax.block_until_ready(enc_out)
    attns = jax.block_until_ready(attns)

    ref_out, ref_attn = encoder_layer_reference(x, params,
                                                n_head=n_head, d_k=d_k, d_v=d_v)

    assert enc_out.shape == (mb, seq, d_model)
    assert attns.shape == (n_head * mb, seq, seq)
    assert jnp.allclose(enc_out, ref_out, atol=1e-4, rtol=1e-4), \
        float(jnp.max(jnp.abs(enc_out - ref_out)))
    assert jnp.allclose(attns, ref_attn, atol=1e-4, rtol=1e-4), \
        float(jnp.max(jnp.abs(attns - ref_attn)))

    print("KERNEL_OK")
</pallas_src>

<mosaic_0001>
module attributes {stable_mosaic.version = 11 : i64} {
  func.func @_encoder_layer_kernel(%arg0: i32, %arg1: memref<1x8x32xf32, #tpu.memory_space<vmem>>, %arg2: memref<32x384xf32, #tpu.memory_space<vmem>>, %arg3: memref<128x32xf32, #tpu.memory_space<vmem>>, %arg4: memref<1x32xf32, #tpu.memory_space<vmem>>, %arg5: memref<1x32xf32, #tpu.memory_space<vmem>>, %arg6: memref<1x32xf32, #tpu.memory_space<vmem>>, %arg7: memref<32x64xf32, #tpu.memory_space<vmem>>, %arg8: memref<1x64xf32, #tpu.memory_space<vmem>>, %arg9: memref<64x32xf32, #tpu.memory_space<vmem>>, %arg10: memref<1x32xf32, #tpu.memory_space<vmem>>, %arg11: memref<1x32xf32, #tpu.memory_space<vmem>>, %arg12: memref<1x32xf32, #tpu.memory_space<vmem>>, %arg13: memref<1x8x32xf32, #tpu.memory_space<vmem>>, %arg14: memref<4x1x8x8xf32, #tpu.memory_space<vmem>>) attributes {dimension_semantics = [#tpu.dimension_semantics<parallel>], iteration_bounds = array<i64: 2>, scalar_prefetch = 0 : i64, scratch_operands = 0 : i64, tpu.core_type = #tpu.core_type<tc>, window_params = [{transform_indices = @transform_0, window_bounds = array<i64: 1, 8, 32>}, {pipeline_mode = #tpu.pipeline_mode<synchronous>, transform_indices = @transform_1, window_bounds = array<i64: 32, 384>}, {pipeline_mode = #tpu.pipeline_mode<synchronous>, transform_indices = @transform_2, window_bounds = array<i64: 128, 32>}, {pipeline_mode = #tpu.pipeline_mode<synchronous>, transform_indices = @transform_3, window_bounds = array<i64: 1, 32>}, {pipeline_mode = #tpu.pipeline_mode<synchronous>, transform_indices = @transform_4, window_bounds = array<i64: 1, 32>}, {pipeline_mode = #tpu.pipeline_mode<synchronous>, transform_indices = @transform_5, window_bounds = array<i64: 1, 32>}, {pipeline_mode = #tpu.pipeline_mode<synchronous>, transform_indices = @transform_6, window_bounds = array<i64: 32, 64>}, {pipeline_mode = #tpu.pipeline_mode<synchronous>, transform_indices = @transform_7, window_bounds = array<i64: 1, 64>}, {pipeline_mode = #tpu.pipeline_mode<synchronous>, transform_indices = @transform_8, window_bounds = array<i64: 64, 32>}, {pipeline_mode = #tpu.pipeline_mode<synchronous>, transform_indices = @transform_9, window_bounds = array<i64: 1, 32>}, {pipeline_mode = #tpu.pipeline_mode<synchronous>, transform_indices = @transform_10, window_bounds = array<i64: 1, 32>}, {pipeline_mode = #tpu.pipeline_mode<synchronous>, transform_indices = @transform_11, window_bounds = array<i64: 1, 32>}, {transform_indices = @transform_12, window_bounds = array<i64: 1, 8, 32>}, {transform_indices = @transform_13, window_bounds = array<i64: 4, 1, 8, 8>}]} {
    %c0 = arith.constant 0 : index
    %c0_0 = arith.constant 0 : index
    %c0_1 = arith.constant 0 : index
    %0 = vector.load %arg1[%c0, %c0_0, %c0_1] : memref<1x8x32xf32, #tpu.memory_space<vmem>>, vector<1x8x32xf32>
    %1 = vector.shape_cast %0 : vector<1x8x32xf32> to vector<8x32xf32>
    %c0_2 = arith.constant 0 : index
    %c0_3 = arith.constant 0 : index
    %2 = vector.load %arg2[%c0_2, %c0_3] : memref<32x384xf32, #tpu.memory_space<vmem>>, vector<32x384xf32>
    %cst = arith.constant dense<0.000000e+00> : vector<8x384xf32>
    %3 = tpu.matmul %1, %2, %cst {dimension_numbers = #tpu.dot_dimension_numbers<[1], [0], [0], [1], [0, 0, 1, 1], [], []>} : vector<8x32xf32>, vector<32x384xf32>, vector<8x384xf32> -> vector<8x384xf32>
    %4 = vector.extract_strided_slice %3 {offsets = [0, 0], sizes = [8, 128], strides = [1, 1]} : vector<8x384xf32> to vector<8x128xf32>
    %5 = vector.extract_strided_slice %3 {offsets = [0, 128], sizes = [8, 128], strides = [1, 1]} : vector<8x384xf32> to vector<8x128xf32>
    %6 = vector.extract_strided_slice %3 {offsets = [0, 256], sizes = [8, 128], strides = [1, 1]} : vector<8x384xf32> to vector<8x128xf32>
    %cst_4 = arith.constant 0.000000e+00 : f32
    %7 = vector.broadcast %cst_4 : f32 to vector<8x32xf32>
    %8 = vector.extract_strided_slice %4 {offsets = [0, 0], sizes = [8, 32], strides = [1, 1]} : vector<8x128xf32> to vector<8x32xf32>
    %9 = vector.extract_strided_slice %5 {offsets = [0, 0], sizes = [8, 32], strides = [1, 1]} : vector<8x128xf32> to vector<8x32xf32>
    %10 = vector.extract_strided_slice %6 {offsets = [0, 0], sizes = [8, 32], strides = [1, 1]} : vector<8x128xf32> to vector<8x32xf32>
    %cst_5 = arith.constant dense<0.000000e+00> : vector<8x8xf32>
    %11 = tpu.matmul %8, %9, %cst_5 {dimension_numbers = #tpu.dot_dimension_numbers<[1], [1], [0], [0], [0, 0, 1, 0], [], []>} : vector<8x32xf32>, vector<8x32xf32>, vector<8x8xf32> -> vector<8x8xf32>
    %cst_6 = arith.constant 0.176776692 : f32
    %12 = vector.broadcast %cst_6 : f32 to vector<8x8xf32>
    %13 = arith.mulf %11, %12 : vector<8x8xf32>
    %cst_7 = arith.constant dense<0xFF800000> : vector<8xf32>
    %14 = vector.multi_reduction <maximumf>, %13, %cst_7 [1] : vector<8x8xf32> to vector<8xf32>
    %15 = vector.shape_cast %14 : vector<8xf32> to vector<8x1xf32>
    %16 = vector.broadcast %15 : vector<8x1xf32> to vector<8x8xf32>
    %17 = arith.subf %13, %16 : vector<8x8xf32>
    %18 = math.exp %17 : vector<8x8xf32>
    %cst_8 = arith.constant dense<0.000000e+00> : vector<8xf32>
    %19 = vector.multi_reduction <add>, %18, %cst_8 [1] : vector<8x8xf32> to vector<8xf32>
    %20 = vector.shape_cast %19 : vector<8xf32> to vector<8x1xf32>
    %21 = vector.broadcast %20 : vector<8x1xf32> to vector<8x8xf32>
    %22 = arith.divf %18, %21 : vector<8x8xf32>
    %c0_9 = arith.constant 0 : index
    %c0_10 = arith.constant 0 : index
    %c0_11 = arith.constant 0 : index
    %c0_12 = arith.constant 0 : index
    %23 = vector.load %arg14[%c0_9, %c0_10, %c0_11, %c0_12] : memref<4x1x8x8xf32, #tpu.memory_space<vmem>>, vector<1x1x8x8xf32>
    %24 = vector.shape_cast %23 : vector<1x1x8x8xf32> to vector<8x8xf32>
    %25 = vector.shape_cast %22 : vector<8x8xf32> to vector<1x1x8x8xf32>
    tpu.vector_store %arg14[%c0_9, %c0_10, %c0_11, %c0_12], %25 {strides = array<i32>} : memref<4x1x8x8xf32, #tpu.memory_space<vmem>>, vector<1x1x8x8xf32>,
    %cst_13 = arith.constant dense<0.000000e+00> : vector<8x32xf32>
    %26 = tpu.matmul %22, %10, %cst_13 {dimension_numbers = #tpu.dot_dimension_numbers<[1], [0], [0], [1], [0, 0, 1, 1], [], []>} : vector<8x8xf32>, vector<8x32xf32>, vector<8x32xf32> -> vector<8x32xf32>
    %c0_14 = arith.constant 0 : index
    %c0_15 = arith.constant 0 : index
    %27 = vector.load %arg3[%c0_14, %c0_15] : memref<128x32xf32, #tpu.memory_space<vmem>>, vector<32x32xf32>
    %cst_16 = arith.constant dense<0.000000e+00> : vector<8x32xf32>
    %28 = tpu.matmul %26, %27, %cst_16 {dimension_numbers = #tpu.dot_dimension_numbers<[1], [0], [0], [1], [0, 0, 1, 1], [], []>} : vector<8x32xf32>, vector<32x32xf32>, vector<8x32xf32> -> vector<8x32xf32>
    %29 = arith.addf %7, %28 : vector<8x32xf32>
    %30 = vector.extract_strided_slice %4 {offsets = [0, 32], sizes = [8, 32], strides = [1, 1]} : vector<8x128xf32> to vector<8x32xf32>
    %31 = vector.extract_strided_slice %5 {offsets = [0, 32], sizes = [8, 32], strides = [1, 1]} : vector<8x128xf32> to vector<8x32xf32>
    %32 = vector.extract_strided_slice %6 {offsets = [0, 32], sizes = [8, 32], strides = [1, 1]} : vector<8x128xf32> to vector<8x32xf32>
    %cst_17 = arith.constant dense<0.000000e+00> : vector<8x8xf32>
    %33 = tpu.matmul %30, %31, %cst_17 {dimension_numbers = #tpu.dot_dimension_numbers<[1], [1], [0], [0], [0, 0, 1, 0], [], []>} : vector<8x32xf32>, vector<8x32xf32>, vector<8x8xf32> -> vector<8x8xf32>
    %cst_18 = arith.constant 0.176776692 : f32
    %34 = vector.broadcast %cst_18 : f32 to vector<8x8xf32>
    %35 = arith.mulf %33, %34 : vector<8x8xf32>
    %cst_19 = arith.constant dense<0xFF800000> : vector<8xf32>
    %36 = vector.multi_reduction <maximumf>, %35, %cst_19 [1] : vector<8x8xf32> to vector<8xf32>
    %37 = vector.shape_cast %36 : vector<8xf32> to vector<8x1xf32>
    %38 = vector.broadcast %37 : vector<8x1xf32> to vector<8x8xf32>
    %39 = arith.subf %35, %38 : vector<8x8xf32>
    %40 = math.exp %39 : vector<8x8xf32>
    %cst_20 = arith.constant dense<0.000000e+00> : vector<8xf32>
    %41 = vector.multi_reduction <add>, %40, %cst_20 [1] : vector<8x8xf32> to vector<8xf32>
    %42 = vector.shape_cast %41 : vector<8xf32> to vector<8x1xf32>
    %43 = vector.broadcast %42 : vector<8x1xf32> to vector<8x8xf32>
    %44 = arith.divf %40, %43 : vector<8x8xf32>
    %c1 = arith.constant 1 : index
    %c0_21 = arith.constant 0 : index
    %c0_22 = arith.constant 0 : index
    %c0_23 = arith.constant 0 : index
    %45 = vector.load %arg14[%c1, %c0_21, %c0_22, %c0_23] : memref<4x1x8x8xf32, #tpu.memory_space<vmem>>, vector<1x1x8x8xf32>
    %46 = vector.shape_cast %45 : vector<1x1x8x8xf32> to vector<8x8xf32>
    %47 = vector.shape_cast %44 : vector<8x8xf32> to vector<1x1x8x8xf32>
    tpu.vector_store %arg14[%c1, %c0_21, %c0_22, %c0_23], %47 {strides = array<i32>} : memref<4x1x8x8xf32, #tpu.memory_space<vmem>>, vector<1x1x8x8xf32>,
    %cst_24 = arith.constant dense<0.000000e+00> : vector<8x32xf32>
    %48 = tpu.matmul %44, %32, %cst_24 {dimension_numbers = #tpu.dot_dimension_numbers<[1], [0], [0], [1], [0, 0, 1, 1], [], []>} : vector<8x8xf32>, vector<8x32xf32>, vector<8x32xf32> -> vector<8x32xf32>
    %c32 = arith.constant 32 : index
    %c0_25 = arith.constant 0 : index
    %49 = vector.load %arg3[%c32, %c0_25] : memref<128x32xf32, #tpu.memory_space<vmem>>, vector<32x32xf32>
    %cst_26 = arith.constant dense<0.000000e+00> : vector<8x32xf32>
    %50 = tpu.matmul %48, %49, %cst_26 {dimension_numbers = #tpu.dot_dimension_numbers<[1], [0], [0], [1], [0, 0, 1, 1], [], []>} : vector<8x32xf32>, vector<32x32xf32>, vector<8x32xf32> -> vector<8x32xf32>
    %51 = arith.addf %29, %50 : vector<8x32xf32>
    %52 = vector.extract_strided_slice %4 {offsets = [0, 64], sizes = [8, 32], strides = [1, 1]} : vector<8x128xf32> to vector<8x32xf32>
    %53 = vector.extract_strided_slice %5 {offsets = [0, 64], sizes = [8, 32], strides = [1, 1]} : vector<8x128xf32> to vector<8x32xf32>
    %54 = vector.extract_strided_slice %6 {offsets = [0, 64], sizes = [8, 32], strides = [1, 1]} : vector<8x128xf32> to vector<8x32xf32>
    %cst_27 = arith.constant dense<0.000000e+00> : vector<8x8xf32>
    %55 = tpu.matmul %52, %53, %cst_27 {dimension_numbers = #tpu.dot_dimension_numbers<[1], [1], [0], [0], [0, 0, 1, 0], [], []>} : vector<8x32xf32>, vector<8x32xf32>, vector<8x8xf32> -> vector<8x8xf32>
    %cst_28 = arith.constant 0.176776692 : f32
    %56 = vector.broadcast %cst_28 : f32 to vector<8x8xf32>
    %57 = arith.mulf %55, %56 : vector<8x8xf32>
    %cst_29 = arith.constant dense<0xFF800000> : vector<8xf32>
    %58 = vector.multi_reduction <maximumf>, %57, %cst_29 [1] : vector<8x8xf32> to vector<8xf32>
    %59 = vector.shape_cast %58 : vector<8xf32> to vector<8x1xf32>
    %60 = vector.broadcast %59 : vector<8x1xf32> to vector<8x8xf32>
    %61 = arith.subf %57, %60 : vector<8x8xf32>
    %62 = math.exp %61 : vector<8x8xf32>
    %cst_30 = arith.constant dense<0.000000e+00> : vector<8xf32>
    %63 = vector.multi_reduction <add>, %62, %cst_30 [1] : vector<8x8xf32> to vector<8xf32>
    %64 = vector.shape_cast %63 : vector<8xf32> to vector<8x1xf32>
    %65 = vector.broadcast %64 : vector<8x1xf32> to vector<8x8xf32>
    %66 = arith.divf %62, %65 : vector<8x8xf32>
    %c2 = arith.constant 2 : index
    %c0_31 = arith.constant 0 : index
    %c0_32 = arith.constant 0 : index
    %c0_33 = arith.constant 0 : index
    %67 = vector.load %arg14[%c2, %c0_31, %c0_32, %c0_33] : memref<4x1x8x8xf32, #tpu.memory_space<vmem>>, vector<1x1x8x8xf32>
    %68 = vector.shape_cast %67 : vector<1x1x8x8xf32> to vector<8x8xf32>
    %69 = vector.shape_cast %66 : vector<8x8xf32> to vector<1x1x8x8xf32>
    tpu.vector_store %arg14[%c2, %c0_31, %c0_32, %c0_33], %69 {strides = array<i32>} : memref<4x1x8x8xf32, #tpu.memory_space<vmem>>, vector<1x1x8x8xf32>,
    %cst_34 = arith.constant dense<0.000000e+00> : vector<8x32xf32>
    %70 = tpu.matmul %66, %54, %cst_34 {dimension_numbers = #tpu.dot_dimension_numbers<[1], [0], [0], [1], [0, 0, 1, 1], [], []>} : vector<8x8xf32>, vector<8x32xf32>, vector<8x32xf32> -> vector<8x32xf32>
    %c64 = arith.constant 64 : index
    %c0_35 = arith.constant 0 : index
    %71 = vector.load %arg3[%c64, %c0_35] : memref<128x32xf32, #tpu.memory_space<vmem>>, vector<32x32xf32>
    %cst_36 = arith.constant dense<0.000000e+00> : vector<8x32xf32>
    %72 = tpu.matmul %70, %71, %cst_36 {dimension_numbers = #tpu.dot_dimension_numbers<[1], [0], [0], [1], [0, 0, 1, 1], [], []>} : vector<8x32xf32>, vector<32x32xf32>, vector<8x32xf32> -> vector<8x32xf32>
    %73 = arith.addf %51, %72 : vector<8x32xf32>
    %74 = vector.extract_strided_slice %4 {offsets = [0, 96], sizes = [8, 32], strides = [1, 1]} : vector<8x128xf32> to vector<8x32xf32>
    %75 = vector.extract_strided_slice %5 {offsets = [0, 96], sizes = [8, 32], strides = [1, 1]} : vector<8x128xf32> to vector<8x32xf32>
    %76 = vector.extract_strided_slice %6 {offsets = [0, 96], sizes = [8, 32], strides = [1, 1]} : vector<8x128xf32> to vector<8x32xf32>
    %cst_37 = arith.constant dense<0.000000e+00> : vector<8x8xf32>
    %77 = tpu.matmul %74, %75, %cst_37 {dimension_numbers = #tpu.dot_dimension_numbers<[1], [1], [0], [0], [0, 0, 1, 0], [], []>} : vector<8x32xf32>, vector<8x32xf32>, vector<8x8xf32> -> vector<8x8xf32>
    %cst_38 = arith.constant 0.176776692 : f32
    %78 = vector.broadcast %cst_38 : f32 to vector<8x8xf32>
    %79 = arith.mulf %77, %78 : vector<8x8xf32>
    %cst_39 = arith.constant dense<0xFF800000> : vector<8xf32>
    %80 = vector.multi_reduction <maximumf>, %79, %cst_39 [1] : vector<8x8xf32> to vector<8xf32>
    %81 = vector.shape_cast %80 : vector<8xf32> to vector<8x1xf32>
    %82 = vector.broadcast %81 : vector<8x1xf32> to vector<8x8xf32>
    %83 = arith.subf %79, %82 : vector<8x8xf32>
    %84 = math.exp %83 : vector<8x8xf32>
    %cst_40 = arith.constant dense<0.000000e+00> : vector<8xf32>
    %85 = vector.multi_reduction <add>, %84, %cst_40 [1] : vector<8x8xf32> to vector<8xf32>
    %86 = vector.shape_cast %85 : vector<8xf32> to vector<8x1xf32>
    %87 = vector.broadcast %86 : vector<8x1xf32> to vector<8x8xf32>
    %88 = arith.divf %84, %87 : vector<8x8xf32>
    %c3 = arith.constant 3 : index
    %c0_41 = arith.constant 0 : index
    %c0_42 = arith.constant 0 : index
    %c0_43 = arith.constant 0 : index
    %89 = vector.load %arg14[%c3, %c0_41, %c0_42, %c0_43] : memref<4x1x8x8xf32, #tpu.memory_space<vmem>>, vector<1x1x8x8xf32>
    %90 = vector.shape_cast %89 : vector<1x1x8x8xf32> to vector<8x8xf32>
    %91 = vector.shape_cast %88 : vector<8x8xf32> to vector<1x1x8x8xf32>
    tpu.vector_store %arg14[%c3, %c0_41, %c0_42, %c0_43], %91 {strides = array<i32>} : memref<4x1x8x8xf32, #tpu.memory_space<vmem>>, vector<1x1x8x8xf32>,
    %cst_44 = arith.constant dense<0.000000e+00> : vector<8x32xf32>
    %92 = tpu.matmul %88, %76, %cst_44 {dimension_numbers = #tpu.dot_dimension_numbers<[1], [0], [0], [1], [0, 0, 1, 1], [], []>} : vector<8x8xf32>, vector<8x32xf32>, vector<8x32xf32> -> vector<8x32xf32>
    %c96 = arith.constant 96 : index
    %c0_45 = arith.constant 0 : index
    %93 = vector.load %arg3[%c96, %c0_45] : memref<128x32xf32, #tpu.memory_space<vmem>>, vector<32x32xf32>
    %cst_46 = arith.constant dense<0.000000e+00> : vector<8x32xf32>
    %94 = tpu.matmul %92, %93, %cst_46 {dimension_numbers = #tpu.dot_dimension_numbers<[1], [0], [0], [1], [0, 0, 1, 1], [], []>} : vector<8x32xf32>, vector<32x32xf32>, vector<8x32xf32> -> vector<8x32xf32>
    %95 = arith.addf %73, %94 : vector<8x32xf32>
    %c0_47 = arith.constant 0 : index
    %c0_48 = arith.constant 0 : index
    %96 = vector.load %arg4[%c0_47, %c0_48] : memref<1x32xf32, #tpu.memory_space<vmem>>, vector<1x32xf32>
    %97 = vector.broadcast %96 : vector<1x32xf32> to vector<8x32xf32>
    %98 = arith.addf %95, %97 : vector<8x32xf32>
    %99 = arith.addf %98, %1 : vector<8x32xf32>
    %c0_49 = arith.constant 0 : index
    %c0_50 = arith.constant 0 : index
    %100 = vector.load %arg5[%c0_49, %c0_50] : memref<1x32xf32, #tpu.memory_space<vmem>>, vector<1x32xf32>
    %c0_51 = arith.constant 0 : index
    %c0_52 = arith.constant 0 : index
    %101 = vector.load %arg6[%c0_51, %c0_52] : memref<1x32xf32, #tpu.memory_space<vmem>>, vector<1x32xf32>
    %cst_53 = arith.constant dense<0.000000e+00> : vector<8xf32>
    %102 = vector.multi_reduction <add>, %99, %cst_53 [1] : vector<8x32xf32> to vector<8xf32>
    %103 = vector.shape_cast %102 : vector<8xf32> to vector<8x1xf32>
    %cst_54 = arith.constant 3.200000e+01 : f32
    %104 = vector.broadcast %cst_54 : f32 to vector<8x1xf32>
    %105 = arith.divf %103, %104 : vector<8x1xf32>
    %106 = vector.broadcast %105 : vector<8x1xf32> to vector<8x32xf32>
    %107 = arith.subf %99, %106 : vector<8x32xf32>
    %108 = arith.mulf %107, %107 : vector<8x32xf32>
    %cst_55 = arith.constant dense<0.000000e+00> : vector<8xf32>
    %109 = vector.multi_reduction <add>, %108, %cst_55 [1] : vector<8x32xf32> to vector<8xf32>
    %110 = vector.shape_cast %109 : vector<8xf32> to vector<8x1xf32>
    %cst_56 = arith.constant 3.100000e+01 : f32
    %111 = vector.broadcast %cst_56 : f32 to vector<8x1xf32>
    %112 = arith.divf %110, %111 : vector<8x1xf32>
    %113 = math.sqrt %112 : vector<8x1xf32>
    %cst_57 = arith.constant 1.000000e-03 : f32
    %114 = vector.broadcast %cst_57 : f32 to vector<8x1xf32>
    %115 = arith.addf %113, %114 : vector<8x1xf32>
    %116 = vector.broadcast %115 : vector<8x1xf32> to vector<8x32xf32>
    %117 = arith.divf %107, %116 : vector<8x32xf32>
    %118 = vector.broadcast %100 : vector<1x32xf32> to vector<8x32xf32>
    %119 = arith.mulf %117, %118 : vector<8x32xf32>
    %120 = vector.broadcast %101 : vector<1x32xf32> to vector<8x32xf32>
    %121 = arith.addf %119, %120 : vector<8x32xf32>
    %c0_58 = arith.constant 0 : index
    %c0_59 = arith.constant 0 : index
    %122 = vector.load %arg7[%c0_58, %c0_59] : memref<32x64xf32, #tpu.memory_space<vmem>>, vector<32x64xf32>
    %cst_60 = arith.constant dense<0.000000e+00> : vector<8x64xf32>
    %123 = tpu.matmul %121, %122, %cst_60 {dimension_numbers = #tpu.dot_dimension_numbers<[1], [0], [0], [1], [0, 0, 1, 1], [], []>} : vector<8x32xf32>, vector<32x64xf32>, vector<8x64xf32> -> vector<8x64xf32>
    %c0_61 = arith.constant 0 : index
    %c0_62 = arith.constant 0 : index
    %124 = vector.load %arg8[%c0_61, %c0_62] : memref<1x64xf32, #tpu.memory_space<vmem>>, vector<1x64xf32>
    %125 = vector.broadcast %124 : vector<1x64xf32> to vector<8x64xf32>
    %126 = arith.addf %123, %125 : vector<8x64xf32>
    %cst_63 = arith.constant 0.000000e+00 : f32
    %127 = vector.broadcast %cst_63 : f32 to vector<8x64xf32>
    %128 = arith.maximumf %126, %127 : vector<8x64xf32>
    %c0_64 = arith.constant 0 : index
    %c0_65 = arith.constant 0 : index
    %129 = vector.load %arg9[%c0_64, %c0_65] : memref<64x32xf32, #tpu.memory_space<vmem>>, vector<64x32xf32>
    %cst_66 = arith.constant dense<0.000000e+00> : vector<8x32xf32>
    %130 = tpu.matmul %128, %129, %cst_66 {dimension_numbers = #tpu.dot_dimension_numbers<[1], [0], [0], [1], [0, 0, 1, 1], [], []>} : vector<8x64xf32>, vector<64x32xf32>, vector<8x32xf32> -> vector<8x32xf32>
    %c0_67 = arith.constant 0 : index
    %c0_68 = arith.constant 0 : index
    %131 = vector.load %arg10[%c0_67, %c0_68] : memref<1x32xf32, #tpu.memory_space<vmem>>, vector<1x32xf32>
    %132 = vector.broadcast %131 : vector<1x32xf32> to vector<8x32xf32>
    %133 = arith.addf %130, %132 : vector<8x32xf32>
    %134 = arith.addf %133, %121 : vector<8x32xf32>
    %c0_69 = arith.constant 0 : index
    %c0_70 = arith.constant 0 : index
    %135 = vector.load %arg11[%c0_69, %c0_70] : memref<1x32xf32, #tpu.memory_space<vmem>>, vector<1x32xf32>
    %c0_71 = arith.constant 0 : index
    %c0_72 = arith.constant 0 : index
    %136 = vector.load %arg12[%c0_71, %c0_72] : memref<1x32xf32, #tpu.memory_space<vmem>>, vector<1x32xf32>
    %cst_73 = arith.constant dense<0.000000e+00> : vector<8xf32>
    %137 = vector.multi_reduction <add>, %134, %cst_73 [1] : vector<8x32xf32> to vector<8xf32>
    %138 = vector.shape_cast %137 : vector<8xf32> to vector<8x1xf32>
    %cst_74 = arith.constant 3.200000e+01 : f32
    %139 = vector.broadcast %cst_74 : f32 to vector<8x1xf32>
    %140 = arith.divf %138, %139 : vector<8x1xf32>
    %141 = vector.broadcast %140 : vector<8x1xf32> to vector<8x32xf32>
    %142 = arith.subf %134, %141 : vector<8x32xf32>
    %143 = arith.mulf %142, %142 : vector<8x32xf32>
    %cst_75 = arith.constant dense<0.000000e+00> : vector<8xf32>
    %144 = vector.multi_reduction <add>, %143, %cst_75 [1] : vector<8x32xf32> to vector<8xf32>
    %145 = vector.shape_cast %144 : vector<8xf32> to vector<8x1xf32>
    %cst_76 = arith.constant 3.100000e+01 : f32
    %146 = vector.broadcast %cst_76 : f32 to vector<8x1xf32>
    %147 = arith.divf %145, %146 : vector<8x1xf32>
    %148 = math.sqrt %147 : vector<8x1xf32>
    %cst_77 = arith.constant 1.000000e-03 : f32
    %149 = vector.broadcast %cst_77 : f32 to vector<8x1xf32>
    %150 = arith.addf %148, %149 : vector<8x1xf32>
    %151 = vector.broadcast %150 : vector<8x1xf32> to vector<8x32xf32>
    %152 = arith.divf %142, %151 : vector<8x32xf32>
    %153 = vector.broadcast %135 : vector<1x32xf32> to vector<8x32xf32>
    %154 = arith.mulf %152, %153 : vector<8x32xf32>
    %155 = vector.broadcast %136 : vector<1x32xf32> to vector<8x32xf32>
    %156 = arith.addf %154, %155 : vector<8x32xf32>
    %c0_78 = arith.constant 0 : index
    %c0_79 = arith.constant 0 : index
    %c0_80 = arith.constant 0 : index
    %157 = vector.load %arg13[%c0_78, %c0_79, %c0_80] : memref<1x8x32xf32, #tpu.memory_space<vmem>>, vector<1x8x32xf32>
    %158 = vector.shape_cast %157 : vector<1x8x32xf32> to vector<8x32xf32>
    %159 = vector.shape_cast %156 : vector<8x32xf32> to vector<1x8x32xf32>
    tpu.vector_store %arg13[%c0_78, %c0_79, %c0_80], %159 {strides = array<i32>} : memref<1x8x32xf32, #tpu.memory_space<vmem>>, vector<1x8x32xf32>,
    return
  }
  func.func @transform_0(%arg0: i32) -> (i32, i32, i32) {
    %c0_i32 = arith.constant 0 : i32
    %c0_i32_0 = arith.constant 0 : i32
    %c0_i32_1 = arith.constant 0 : i32
    return %arg0, %c0_i32, %c0_i32_0 : i32, i32, i32
  }
  func.func @transform_1(%arg0: i32) -> (i32, i32) {
    %c0_i32 = arith.constant 0 : i32
    %c0_i32_0 = arith.constant 0 : i32
    %c0_i32_1 = arith.constant 0 : i32
    return %c0_i32, %c0_i32_0 : i32, i32
  }
  func.func @transform_2(%arg0: i32) -> (i32, i32) {
    %c0_i32 = arith.constant 0 : i32
    %c0_i32_0 = arith.constant 0 : i32
    %c0_i32_1 = arith.constant 0 : i32
    return %c0_i32, %c0_i32_0 : i32, i32
  }
  func.func @transform_3(%arg0: i32) -> (i32, i32) {
    %c0_i32 = arith.constant 0 : i32
    %c0_i32_0 = arith.constant 0 : i32
    %c0_i32_1 = arith.constant 0 : i32
    return %c0_i32, %c0_i32_0 : i32, i32
  }
  func.func @transform_4(%arg0: i32) -> (i32, i32) {
    %c0_i32 = arith.constant 0 : i32
    %c0_i32_0 = arith.constant 0 : i32
    %c0_i32_1 = arith.constant 0 : i32
    return %c0_i32, %c0_i32_0 : i32, i32
  }
  func.func @transform_5(%arg0: i32) -> (i32, i32) {
    %c0_i32 = arith.constant 0 : i32
    %c0_i32_0 = arith.constant 0 : i32
    %c0_i32_1 = arith.constant 0 : i32
    return %c0_i32, %c0_i32_0 : i32, i32
  }
  func.func @transform_6(%arg0: i32) -> (i32, i32) {
    %c0_i32 = arith.constant 0 : i32
    %c0_i32_0 = arith.constant 0 : i32
    %c0_i32_1 = arith.constant 0 : i32
    return %c0_i32, %c0_i32_0 : i32, i32
  }
  func.func @transform_7(%arg0: i32) -> (i32, i32) {
    %c0_i32 = arith.constant 0 : i32
    %c0_i32_0 = arith.constant 0 : i32
    %c0_i32_1 = arith.constant 0 : i32
    return %c0_i32, %c0_i32_0 : i32, i32
  }
  func.func @transform_8(%arg0: i32) -> (i32, i32) {
    %c0_i32 = arith.constant 0 : i32
    %c0_i32_0 = arith.constant 0 : i32
    %c0_i32_1 = arith.constant 0 : i32
    return %c0_i32, %c0_i32_0 : i32, i32
  }
  func.func @transform_9(%arg0: i32) -> (i32, i32) {
    %c0_i32 = arith.constant 0 : i32
    %c0_i32_0 = arith.constant 0 : i32
    %c0_i32_1 = arith.constant 0 : i32
    return %c0_i32, %c0_i32_0 : i32, i32
  }
  func.func @transform_10(%arg0: i32) -> (i32, i32) {
    %c0_i32 = arith.constant 0 : i32
    %c0_i32_0 = arith.constant 0 : i32
    %c0_i32_1 = arith.constant 0 : i32
    return %c0_i32, %c0_i32_0 : i32, i32
  }
  func.func @transform_11(%arg0: i32) -> (i32, i32) {
    %c0_i32 = arith.constant 0 : i32
    %c0_i32_0 = arith.constant 0 : i32
    %c0_i32_1 = arith.constant 0 : i32
    return %c0_i32, %c0_i32_0 : i32, i32
  }
  func.func @transform_12(%arg0: i32) -> (i32, i32, i32) {
    %c0_i32 = arith.constant 0 : i32
    %c0_i32_0 = arith.constant 0 : i32
    %c0_i32_1 = arith.constant 0 : i32
    return %arg0, %c0_i32, %c0_i32_0 : i32, i32, i32
  }
  func.func @transform_13(%arg0: i32) -> (i32, i32, i32, i32) {
    %c0_i32 = arith.constant 0 : i32
    %c0_i32_0 = arith.constant 0 : i32
    %c0_i32_1 = arith.constant 0 : i32
    %c0_i32_2 = arith.constant 0 : i32
    return %c0_i32, %arg0, %c0_i32_0, %c0_i32_1 : i32, i32, i32, i32
  }
}

</mosaic_0001>

<bundles_post_ra>
// kernel: encoder_layer_forward.1
= control target key start
LH: loop header
LB: loop body
LE: loop exit
PB: predicated region body
PF: predicated region fallthrough
CT: control target
= control target key end

     0   :  { %s1897_s0 = inlined_call_operand.vmem [shape: f32[2,8,32], index: 0, kind: input, shape index: {}]   ;;  %s1898_s1 = inlined_call_operand.vmem [shape: f32[32,384], index: 1, kind: input, shape index: {}]   ;;  %s1899_s2 = inlined_call_operand.vmem [shape: f32[128,32], index: 2, kind: input, shape index: {}]   ;;  %s1900_s3 = inlined_call_operand.vmem [shape: f32[1,32], index: 3, kind: input, shape index: {}]   ;;  %s1901_s4 = inlined_call_operand.vmem [shape: f32[1,32], index: 4, kind: input, shape index: {}]   ;;  %s1902_s5 = inlined_call_operand.vmem [shape: f32[1,32], index: 5, kind: input, shape index: {}]   ;;  %s1903_s6 = inlined_call_operand.vmem [shape: f32[32,64], index: 6, kind: input, shape index: {}]   ;;  %s1904_s7 = inlined_call_operand.vmem [shape: f32[1,64], index: 7, kind: input, shape index: {}]   ;;  %s1905_s8 = inlined_call_operand.vmem [shape: f32[64,32], index: 8, kind: input, shape index: {}]   ;;  %s1906_s9 = inlined_call_operand.vmem [shape: f32[1,32], index: 9, kind: input, shape index: {}]   ;;  %s1907_s10 = inlined_call_operand.vmem [shape: f32[1,32], index: 10, kind: input, shape index: {}]   ;;  %s1908_s11 = inlined_call_operand.vmem [shape: f32[1,32], index: 11, kind: input, shape index: {}]   ;;  %s1909_s12 = inlined_call_operand.hbm [shape: f32[2,8,32], index: 12, kind: output, shape index: {0}]   ;;  %s1910_s13 = inlined_call_operand.hbm [shape: f32[4,2,8,8], index: 13, kind: output, shape index: {1}]  }
   0x1   :  { %1915 = sst [smem:[#allocation12_spill]] %s1897_s0 }
   0x2   :  { %1916 = sst [smem:[#allocation13_spill]] %s1898_s1 }
   0x3   :  { %1917 = sst [smem:[#allocation14_spill]] %s1899_s2 }
   0x4   :  { %1918 = sst [smem:[#allocation15_spill]] %s1900_s3 }
   0x5   :  { %19 = vsyncpa [#allocation3], 0 }
   0x6   :  { %21 = vsyncpa [#allocation3 + $0x1], 0 }
   0x7   :  { %22 = vsyncpa [#allocation5], 0 }
   0x8   :  { %24 = vsyncpa [#allocation5 + $0x1], 0  ;;  %s1567_s25 = smov 0   ;;  %s1569_s26 = smov 0  }
   0x9   :  { %s1571_s27 = smov 0   ;;  %s1573_s28 = smov 0  }
   0xa LB: > { %1919 = sst [smem:[#allocation8_spill]] %s1483_s27  ;;  %s1588_s29 = sadd.s32 4294967295, %s1487_s28   ;;  %s1487_s28 = sphi %s1573_s28, %s1930_s28   ;;  %s1483_s27 = sphi %s1571_s27, %s1932_s27   ;;  %s1479_s26 = sphi %s1569_s26, %s1934_s26   ;;  %s1475_s25 = sphi %s1567_s25, %s1933_s25  }
   0xb   : > { %s1269_s30 = sadd.s32 4294967294, %s1487_s28   ;;  %s1592_s14 = sadd.s32 1, %s1487_s28  }
   0xc   : > { %1920 = sst [smem:[#allocation9_spill]] %s1592_s14  ;;  %s294_s15 = sadd.s32 1, %s1483_s27 }
   0xd   : > { %s291_s16 = ssub.s32 %s1487_s28, %s1592_s14  ;;  %p304_p0 = scmp.ne.s32.totalorder %s1483_s27, %s1479_s26 }
   0xe   : > { %p292_p1 = scmp.eq.s32.totalorder %s291_s16, 0  ;;  %p305_p2 = scmp.eq.s32.totalorder %s1588_s29, 1 }
   0xf   : > { %p310_p3 = scmp.ne.s32.totalorder %s1479_s26, %s1475_s25  ;;  %p311_p4 = scmp.eq.s32.totalorder %s1269_s30, 1 }
  0x10   : > { %s1603_s17 = scalar_select %p292_p1, %s1483_s27, %s294_s15  }
  0x11   : > { %p1605_p5 = por %p305_p2, %p304_p0  ;;  %p1609_p6 = por %p311_p4, %p310_p3 }
  0x12   : > { %1921 = sst [smem:[#allocation10_spill]] %s1603_s17  ;;  %p1272_p7 = scmp.ge.s32.totalorder %s1487_s28, 1 }
  0x13   : > { %s1923_s19 = scalar_select %p1609_p6, 1, 0 }
  0x14   : > { %p395_p8 = scmp.lt.s32.totalorder %s1487_s28, 3 }
  0x15   : > { %1924 = sst [smem:[#allocation11_spill]] %s1923_s19 }
  0x16   : > { %p396_p9 = pnand %p1272_p7, %p395_p8 }
  0x17   : > { %s1925_s1 = sld [smem:[#allocation13_spill]] (!%p396_p9)  ;;  %p443_p10 = scmp.lt.s32.totalorder (!%p396_p9), %s1588_s29, 1 }
  0x18   : > { %399 = sbr.rel (%p396_p9) target bundleno = 2220 (0x8ac), region = 68  ;;  %s1926_s0 = sld [smem:[#allocation12_spill]] (!%p396_p9) }
  0x19   : > { %s1489_s27 = smov (!%p396_p9), 64   ;;  %s1490_s14 = smov (!%p396_p9), 96  }
  0x1a   : > { %s1491_s19 = smov (!%p396_p9), 32   ;;  %s1927_s2 = sld [smem:[#allocation14_spill]] (!%p396_p9) }
  0x1b   : > { %s1695_s15 = sand.u32 (!%p396_p9), 1, %s1479_s26   ;;  %s1928_s3 = sld [smem:[#allocation15_spill]] (!%p396_p9) }
  0x1c   : > { %s1146_s23 = scalar_lea.sflag (!%p396_p9), [#allocation5], %s1695_s15 }
  0x1d   : > { %v458_v0 = vld [vmem:[%s1925_s1 + $0x50] sm:$0xff]  ;;  %v455_v1 = vld [vmem:[%s1925_s1 + $0x38] sm:$0xff]  ;;  %v457_v2 = vld [vmem:[%s1925_s1 + $0x48] sm:$0xff]  ;;  %s444_s24 = scalar_select %p443_p10, %s1588_s29, 1  ;;  %vm460_vm0 = vcmask 261120   ;;  %vm551_vm1 = vcmask 64512  }
  0x1e   : > { %496 = vmatpush.msra.mxu1 %v458_v0  ;;  %476 = vmatpush.msra.mxu0 %v457_v2  ;;  %v452_v3 = vld [vmem:[%s1925_s1 + $0x20] sm:$0xff]  ;;  %v454_v4 = vld [vmem:[%s1925_s1 + $0x30] sm:$0xff]  ;;  %v449_v5 = vld [vmem:[%s1925_s1 + $0x8] sm:$0xff] }
  0x1f   : > { %v451_v6 = vld [vmem:[%s1925_s1 + $0x18] sm:$0xff]  ;;  %s1275_s30 = sshll.u32 %s444_s24, 3  ;;  %v448_v7 = vld [vmem:[%s1925_s1] sm:$0xff]  ;;  %v453_v19 = vld [vmem:[%s1925_s1 + $0x28] sm:$0xff] }
  0x20   : > { %497 = vmatpush.msra.mxu1 %v455_v1  ;;  %477 = vmatpush.msra.mxu0 %v454_v4  ;;  %s446_s16 = scalar_lea.vmem %s1926_s0, %s1275_s30  ;;  %v459_v17 = vld [vmem:[%s1925_s1 + $0x58] sm:$0xff]  ;;  %v456_v18 = vld [vmem:[%s1925_s1 + $0x40] sm:$0xff]  ;;  %v450_v20 = vld [vmem:[%s1925_s1 + $0x10] sm:$0xff]  ;;  %s1413_s1 = scalar_lea.hbm %s1910_s13, 64 }
  0x21   : > { %v1644_v8 = vld [vmem:[%s446_s16] sm:$0xff]  ;;  %516 = vmatpush.msra.mxu2 %v459_v17  ;;  %v603_v30 = vld [vmem:[%s1927_s2 + $0x18] sm:$0xff]  ;;  %v602_v31 = vld [vmem:[%s1927_s2 + $0x10] sm:$0xff]  ;;  %s1274_s16 = sshll.u32 %s1695_s15, 5 }
  0x22   : > { %498 = vmatpush.msra.mxu1 %v452_v3  ;;  %478 = vmatpush.msra.mxu0 %v451_v6  ;;  %v601_v32 = vld [vmem:[%s1927_s2 + $0x8] sm:$0xff]  ;;  %v600_v34 = vld [vmem:[%s1927_s2] sm:$0xff]  ;;  %s1700_s20 = scalar_lea.vmem [#allocation4], %s1274_s16 }
  0x23   : > { %517 = vmatpush.msra.mxu2 %v456_v18  ;;  %s1171_s21 = sshll.u32 %s1700_s20, 4  ;;  %s1172_s21 = int_to_ptr.vmem [resolvable:$true] %s1171_s21 }
  0x24   : > { %499 = vmatpush.msra.mxu1 %v449_v5  ;;  %479 = vmatpush.msra.mxu0 %v448_v7 }
  0x25   : > { %1277 = vmatmul.msk.f32.vlgmr.msra.gmra.mxu1 %vm460_vm0, %v1644_v8  ;;  %1276 = vmatmul.msk.f32.vlgmr.msra.gmra.mxu0 %vm460_vm0, %v1644_v8 }
  0x26   : > { %518 = vmatpush.msra.mxu2 %v453_v19 }
  0x28   : > { %519 = vmatpush.msra.mxu2 %v450_v20 }
  0x29   : > { %1278 = vmatmul.msk.f32.vlgmr.msra.gmra.mxu2 %vm460_vm0, %v1644_v8 }
  0xa2   : > { %v501_v9 = vpop.f32.mrf.mxu1  ;;  %v481_v10 = vpop.f32.mrf.mxu0 }
  0xa3   : > { %738 = vrot.lane.b32.xlu2 %v501_v9, %s1489_s27  ;;  %606 = vrot.lane.b32.xlu1 %v501_v9, %s1490_s14 }
  0xa4   : > { %1279 = vmatpush.xpose.msk.msrb.mxu0 %vm460_vm0, %v501_v9 }
  0xa7   : > { %1280 = vmatmul.msk.f32.vlgmr.msrb.gmra.mxu0 %vm460_vm0, %v481_v10 }
  0xab   : > { %847 = vrot.lane.b32.xlu2 %v501_v9, %s1491_s19  ;;  %604 = vrot.lane.b32.xlu1 %v481_v10, %s1490_s14 }
  0xac   : > { %v1678_v29 = vpop.f32.mrf.mxu2 }
  0xad   : > { %595 = vmatpush.msra.mxu3 %v1678_v29 }
  0xaf   : > { %728 = vmatpush.msrb.mxu3 %v603_v30 }
  0xb1   : > { %729 = vmatpush.msrb.mxu3 %v602_v31 }
  0xb3   : > { %845 = vrot.lane.b32.xlu1 %v481_v10, %s1491_s19  ;;  %730 = vmatpush.msrb.mxu3 %v601_v32 }
  0xb5   : > { %731 = vmatpush.msrb.mxu3 %v600_v34  ;;  %v688_v34 = vld [vmem:[%s1927_s2 + $0x30] sm:$0xff] }
  0xfd   : > { %v739_v12 = vpop.permute.xlu2 %738 }
 0x105   : > { %v848_v33 = vpop.permute.xlu2 %847 }
 0x115   : > { %v607_v11 = vpop.permute.xlu1 %606 }
 0x116   : > { %1282 = vmatpush.xpose.msk.msra.mxu0 %vm460_vm0, %v607_v11 }
 0x11a   : > { %1288 = vmatpush.xpose.msk.msrb.mxu0 %vm460_vm0, %v739_v12 }
 0x11d   : > { %v605_v13 = vpop.permute.xlu1 %604 }
 0x11e   : > { %1283 = vmatmul.msk.f32.vlgmr.msra.gmra.mxu0 %vm460_vm0, %v605_v13 }
 0x124   : > { %v547_v14 = vpop.f32.mrf.mxu0 }
 0x125   : > { %v550_v15 = vmul.f32 0.17677669, %v547_v14  ;;  %v846_v5 = vpop.permute.xlu1 %845 }
 0x127   : > { %v552_v16 = vsel %vm551_vm1, %v550_v15, -inf }
 0x128   : > { %553 = vmax.xlane.f32.xlu0 %v552_v16 }
 0x19b   : > { %v554_v21 = vpop.xlane.xlu0 %553  ;;  %v629_v22 = vpop.f32.mrf.mxu0 }
 0x19c   : > { %v555_v23 = vsub.f32 %v550_v15, %v554_v21  ;;  %v632_v24 = vmul.f32 0.17677669, %v629_v22 }
 0x19e   : > { %v556_v25 = vmul.f32 1.442695, %v555_v23  ;;  %v633_v26 = vsel %vm551_vm1, %v632_v24, -inf }
 0x19f   : > { %634 = vmax.xlane.f32.xlu2 %v633_v26 }
 0x1a0   : > { %1365 = vpow2.f32 %v556_v25 }
 0x1a6   : > { %v1366_v27 = vpop.eup %1365 }
 0x1a7   : > { %v558_v28 = vsel %vm551_vm1, %v1366_v27, 0.0 }
 0x1a8   : > { %559 = vadd.xlane.f32.xlu0 %v558_v28 }
 0x1bc   : > { %736 = vrot.lane.b32.xlu0 %v481_v10, %s1489_s27 }
 0x212   : > { %v635_v35 = vpop.xlane.xlu2 %634 }
 0x213   : > { %v636_v36 = vsub.f32 %v632_v24, %v635_v35  ;;  %v687_v35 = vld [vmem:[%s1927_s2 + $0x28] sm:$0xff] }
 0x215   : > { %v637_v37 = vmul.f32 1.442695, %v636_v36 }
 0x217   : > { %1367 = vpow2.f32 %v637_v37 }
 0x21b   : > { %v560_v38 = vpop.xlane.xlu0 %559 }
 0x21c   : > { %1369 = vrcp.f32 %v560_v38  ;;  %v572_v44 = vand.u32 2147483648, %v560_v38  ;;  %v570_v46 = vand.u32 2147483647, %v560_v38  ;;  %vm566_vm3 = vweird.f32 %v560_v38 }
 0x21d   : > { %v1368_v39 = vpop.eup %1367 }
 0x21e   : > { %v639_v40 = vsel %vm551_vm1, %v1368_v39, 0.0  ;;  %v573_v48 = vor.u32 1.1754944e-38, %v572_v44  ;;  %vm571_vm5 = vcmp.eq.f32.partialorder %v570_v46, 8.507059e+37 }
 0x21f   : > { %640 = vadd.xlane.f32.xlu2 %v639_v40 }
 0x222   : > { %v1370_v41 = vpop.eup %1369 }
 0x223   : > { %v562_v42 = vmul.f32 %v1370_v41, %v560_v38  ;;  %vm567_vm2 = vweird.f32 %v1370_v41 }
 0x224   : > { %vm568_vm4 = vmor %vm566_vm3, %vm567_vm2 }
 0x225   : > { %v563_v43 = vsub.f32 1.0, %v562_v42 }
 0x227   : > { %v564_v45 = vmul.f32 %v1370_v41, %v563_v43 }
 0x229   : > { %v565_v47 = vadd.f32 %v1370_v41, %v564_v45 }
 0x22b   : > { %v569_v49 = vsel %vm568_vm4, %v1370_v41, %v565_v47 }
 0x22c   : > { %v574_v50 = vsel %vm571_vm5, %v573_v48, %v569_v49 }
 0x22d   : > { %v575_v51 = vmul.f32 %v1366_v27, %v574_v50 }
 0x22e   : > { %v737_v52 = vpop.permute.xlu0 %736 }
 0x22f   : > { %1281 = vmatmul.msk.f32.vlgmr.msra.gmra.mxu3 %vm551_vm1, %v575_v51  ;;  %1289 = vmatmul.msk.f32.vlgmr.msrb.gmra.mxu0 %vm460_vm0, %v737_v52  ;;  %576 = vst.msk [vmem:[%s1700_s20] sm:$0xff] %vm551_vm1, %v575_v51 }
 0x230   : > { %1293 = vmatpush.xpose.msk.msra.mxu3 %vm460_vm0, %v848_v33  ;;  %v689_v33 = vld [vmem:[%s1927_s2 + $0x38] sm:$0xff] }
 0x231   : > { %705 = vmatpush.msrb.mxu2 %v689_v33 }
 0x233   : > { %706 = vmatpush.msrb.mxu2 %v688_v34 }
 0x235   : > { %707 = vmatpush.msrb.mxu2 %v687_v35 }
 0x292   : > { %v641_v53 = vpop.xlane.xlu2 %640 }
 0x293   : > { %1371 = vrcp.f32 %v641_v53  ;;  %v653_v57 = vand.u32 2147483648, %v641_v53  ;;  %v651_v59 = vand.u32 2147483647, %v641_v53  ;;  %vm647_vm7 = vweird.f32 %v641_v53 }
 0x295   : > { %v654_v61 = vor.u32 1.1754944e-38, %v653_v57  ;;  %vm652_vm9 = vcmp.eq.f32.partialorder %v651_v59, 8.507059e+37  ;;  %v926_v57 = vld [vmem:[%s1927_s2 + $0x60] sm:$0xff]  ;;  %v818_v59 = vld [vmem:[%s1927_s2 + $0x48] sm:$0xff] }
 0x299   : > { %v1372_v54 = vpop.eup %1371 }
 0x29a   : > { %v643_v55 = vmul.f32 %v1372_v54, %v641_v53  ;;  %vm648_vm6 = vweird.f32 %v1372_v54  ;;  %v929_v53 = vld [vmem:[%s1927_s2 + $0x78] sm:$0xff] }
 0x29b   : > { %vm649_vm8 = vmor %vm647_vm7, %vm648_vm6 }
 0x29c   : > { %v644_v56 = vsub.f32 1.0, %v643_v55  ;;  %v820_v55 = vld [vmem:[%s1927_s2 + $0x58] sm:$0xff] }
 0x29e   : > { %v645_v58 = vmul.f32 %v1372_v54, %v644_v56  ;;  %v927_v56 = vld [vmem:[%s1927_s2 + $0x68] sm:$0xff] }
 0x2a0   : > { %v646_v60 = vadd.f32 %v1372_v54, %v645_v58  ;;  %v819_v58 = vld [vmem:[%s1927_s2 + $0x50] sm:$0xff] }
 0x2a2   : > { %v650_v62 = vsel %vm649_vm8, %v1372_v54, %v646_v60  ;;  %v928_v54 = vld [vmem:[%s1927_s2 + $0x70] sm:$0xff]  ;;  %v817_v60 = vld [vmem:[%s1927_s2 + $0x40] sm:$0xff] }
 0x2a3   : > { %v655_v63 = vsel %vm652_vm9, %v654_v61, %v650_v62 }
 0x2a4   : > { %v656_v0 = vmul.f32 %v1368_v39, %v655_v63  ;;  %v686_v39 = vld [vmem:[%s1927_s2 + $0x20] sm:$0xff] }
 0x2a5   : > { %708 = vmatpush.msrb.mxu2 %v686_v39 }
 0x2a6   : > { %1284 = vst.msk [vmem:[%s1700_s20 + $0x8] sm:$0xff] %vm551_vm1, %v656_v0 }
 0x2a7   : > { %836 = vmatpush.msra.mxu2 %v820_v55 }
 0x2a9   : > { %837 = vmatpush.msra.mxu2 %v819_v58 }
 0x2ab   : > { %838 = vmatpush.msra.mxu2 %v818_v59  ;;  %v1359_v59 = vld [vmem:[%s1901_s4] ss:$0 sm:$0xff] }
 0x2ac   : > { %v761_v1 = vpop.f32.mrf.mxu0 }
 0x2ad   : > { %v764_v2 = vmul.f32 0.17677669, %v761_v1  ;;  %839 = vmatpush.msra.mxu2 %v817_v60 }
 0x2af   : > { %v765_v3 = vsel %vm551_vm1, %v764_v2, -inf }
 0x2b0   : > { %766 = vmax.xlane.f32.xlu1 %v765_v3  ;;  %v1358_v3 = vld [vmem:[%s1928_s3] ss:$0 sm:$0xff] }
 0x2b2   : > { %v597_v4 = vpop.f32.mrf.mxu3 }
 0x2b3   : > { %1287 = vmatmul.msk.f32.vlgmr.msrb.gmra.mxu3 %vm460_vm0, %v597_v4 }
 0x2bb   : > { %1294 = vmatmul.msk.f32.vlgmr.msra.gmra.mxu3 %vm460_vm0, %v846_v5 }
 0x323   : > { %v767_v6 = vpop.xlane.xlu1 %766 }
 0x324   : > { %v768_v7 = vsub.f32 %v764_v2, %v767_v6 }
 0x326   : > { %v769_v9 = vmul.f32 1.442695, %v768_v7 }
 0x328   : > { %1373 = vpow2.f32 %v769_v9 }
 0x32e   : > { %v1374_v10 = vpop.eup %1373 }
 0x32f   : > { %v771_v11 = vsel %vm551_vm1, %v1374_v10, 0.0 }
 0x330   : > { %772 = vadd.xlane.f32.xlu2 %v771_v11 }
 0x336   : > { %v1711_v12 = vpop.f32.mrf.mxu3 }
 0x33e   : > { %v870_v13 = vpop.f32.mrf.mxu3 }
 0x33f   : > { %v873_v14 = vmul.f32 0.17677669, %v870_v13 }
 0x341   : > { %v874_v15 = vsel %vm551_vm1, %v873_v14, -inf }
 0x342   : > { %875 = vmax.xlane.f32.xlu0 %v874_v15 }
 0x348   : > { %660 = vrot.lane.b32.xlu2 %v1678_v29, %s1490_s14 }
 0x356   : > { %900 = vrot.lane.b32.xlu0 %v1678_v29, %s1491_s19 }
 0x3a3   : > { %v773_v16 = vpop.xlane.xlu2 %772 }
 0x3a4   : > { %1375 = vrcp.f32 %v773_v16  ;;  %v785_v21 = vand.u32 2147483648, %v773_v16  ;;  %v783_v23 = vand.u32 2147483647, %v773_v16  ;;  %vm779_vm11 = vweird.f32 %v773_v16 }
 0x3a6   : > { %v786_v25 = vor.u32 1.1754944e-38, %v785_v21  ;;  %vm784_vm13 = vcmp.eq.f32.partialorder %v783_v23, 8.507059e+37  ;;  %v1493_v21 = vmov 31.0  }
 0x3aa   : > { %v1376_v17 = vpop.eup %1375 }
 0x3ab   : > { %v775_v18 = vmul.f32 %v1376_v17, %v773_v16  ;;  %v661_v19 = vpop.permute.xlu2 %660  ;;  %vm780_vm10 = vweird.f32 %v1376_v17 }
 0x3ac   : > { %681 = vmatpush.msrb.mxu1 %v661_v19  ;;  %vm781_vm12 = vmor %vm779_vm11, %vm780_vm10  ;;  %vm1066_vm11 = vcmask 523264  }
 0x3ad   : > { %v776_v20 = vsub.f32 1.0, %v775_v18  ;;  %1285 = vmatmul.msk.f32.vlgmr.msrb.gmra.mxu1 %vm551_vm1, %v656_v0 }
 0x3af   : > { %v777_v22 = vmul.f32 %v1376_v17, %v776_v20 }
 0x3b1   : > { %v778_v24 = vadd.f32 %v1376_v17, %v777_v22 }
 0x3b3   : > { %v782_v26 = vsel %vm781_vm12, %v1376_v17, %v778_v24 }
 0x3b4   : > { %v787_v27 = vsel %vm784_vm13, %v786_v25, %v782_v26 }
 0x3b5   : > { %v876_v28 = vpop.xlane.xlu0 %875  ;;  %v788_v30 = vmul.f32 %v1374_v10, %v787_v27  ;;  %v1492_v10 = vmov 32.0   ;;  %v1025_v27 = vld [vmem:[%s1903_s6 + $0x18] sm:$0xff] }
 0x3b6   : > { %v877_v31 = vsub.f32 %v873_v14, %v876_v28  ;;  %v1024_v28 = vld [vmem:[%s1903_s6 + $0x10] sm:$0xff] }
 0x3b7   : > { %1290 = vst.msk [vmem:[%s1700_s20 + $0x10] sm:$0xff] %vm551_vm1, %v788_v30 }
 0x3b8   : > { %v878_v32 = vmul.f32 1.442695, %v877_v31 }
 0x3ba   : > { %1377 = vpow2.f32 %v878_v32  ;;  %v1022_v32 = vld [vmem:[%s1903_s6] sm:$0xff] }
 0x3c0   : > { %v1378_v36 = vpop.eup %1377 }
 0x3c1   : > { %v880_v37 = vsel %vm551_vm1, %v1378_v36, 0.0 }
 0x3c2   : > { %881 = vadd.xlane.f32.xlu1 %v880_v37 }
 0x3c8   : > { %v901_v38 = vpop.permute.xlu0 %900 }
 0x3c9   : > { %921 = vmatpush.msra.mxu0 %v901_v38 }
 0x3db   : > { %791 = vrot.lane.b32.xlu1 %v1678_v29, %s1489_s27  ;;  %s1302_s27 = sshll.u32 %s1588_s29, 3 }
 0x3dc   : > { %s1170_s19 = scalar_lea.hbm %s1910_s13, %s1302_s27 }
 0x3dd   : > { %s1173_s22 = sshll.u32 %s1170_s19, 4  ;;  %s1174_s22 = int_to_ptr.hbm [resolvable:$true] %s1173_s22 }
 0x3de   : > { %s1407_s24 = sshra.s32 %s1174_s22, 4  ;;  %s1408_s24 = int_to_ptr.hbm [resolvable:$true] %s1407_s24 }
 0x3df   : > { %s1409_s30 = scalar_lea.hbm %s1408_s24, 32  ;;  %p1414_p0 = scmp.lt.s32.totalorder %s1408_s24, %s1910_s13 }
 0x3e0   : > { %p1410_p11 = scmp.ne.s32.totalorder %s1408_s24, %s1409_s30  ;;  %p1415_p1 = scmp.lt.s32.totalorder %s1413_s1, %s1409_s30 }
 0x3e2   : > { %p1411_p12 = pnand %p1410_p11, %p1605_p5  ;;  %p1416_p2 = por %p1415_p1, %p1414_p0 }
 0x3e4   : > { %p1412_p13 = pneg %p1411_p12 }
 0x3e6   : > { %p1417_p3 = pnand %p1416_p2, %p1412_p13 }
 0x42a   : > { %v683_v40 = vpop.f32.mrf.mxu1 }
 0x42b   : > { %1286 = vmatmul.msk.f32.vlgmr.msrb.gmra.mxu2 %vm460_vm0, %v683_v40  ;;  %v1061_v40 = vld [vmem:[%s1905_s8 + $0x38] sm:$0xff] }
 0x42c   : > { %1045 = vmatpush.msrb.mxu2 %v1025_v27  ;;  %1078 = vmatpush.msrb.mxu3 %v1061_v40 }
 0x42e   : > { %1046 = vmatpush.msrb.mxu2 %v1024_v28 }
 0x435   : > { %v882_v41 = vpop.xlane.xlu1 %881 }
 0x436   : > { %1379 = vrcp.f32 %v882_v41  ;;  %v894_v45 = vand.u32 2147483648, %v882_v41  ;;  %v892_v47 = vand.u32 2147483647, %v882_v41  ;;  %vm888_vm15 = vweird.f32 %v882_v41 }
 0x437   : > { %1381 = vrcp.f32 %v1492_v10 }
 0x438   : > { %v895_v29 = vor.u32 1.1754944e-38, %v894_v45  ;;  %vm893_vm3 = vcmp.eq.f32.partialorder %v892_v47, 8.507059e+37  ;;  %1383 = vrcp.f32 %v1493_v21 }
 0x43c   : > { %v1380_v42 = vpop.eup %1379 }
 0x43d   : > { %v884_v43 = vmul.f32 %v1380_v42, %v882_v41  ;;  %vm889_vm14 = vweird.f32 %v1380_v42  ;;  %v1382_v11 = vpop.eup %1381  ;;  %v1060_v41 = vld [vmem:[%s1905_s8 + $0x30] sm:$0xff] }
 0x43e   : > { %vm890_vm2 = vmor %vm888_vm15, %vm889_vm14  ;;  %v966_v13 = vmul.f32 32.0, %v1382_v11  ;;  %v1384_v22 = vpop.eup %1383  ;;  %1079 = vmatpush.msrb.mxu3 %v1060_v41 }
 0x43f   : > { %v885_v44 = vsub.f32 1.0, %v884_v43  ;;  %v979_v23 = vmul.f32 31.0, %v1384_v22  ;;  %vm983_vm4 = vweird.f32 %v1384_v22  ;;  %v1059_v43 = vld [vmem:[%s1905_s8 + $0x28] sm:$0xff] }
 0x440   : > { %v967_v14 = vsub.f32 1.0, %v966_v13  ;;  %1080 = vmatpush.msrb.mxu3 %v1059_v43 }
 0x441   : > { %v886_v46 = vmul.f32 %v1380_v42, %v885_v44  ;;  %v980_v24 = vsub.f32 1.0, %v979_v23 }
 0x443   : > { %v887_v48 = vadd.f32 %v1380_v42, %v886_v46  ;;  %v981_v25 = vmul.f32 %v1384_v22, %v980_v24  ;;  %v1058_v46 = vld [vmem:[%s1905_s8 + $0x20] sm:$0xff] }
 0x444   : > { %1081 = vmatpush.msrb.mxu3 %v1058_v46 }
 0x445   : > { %v891_v49 = vsel %vm890_vm2, %v1380_v42, %v887_v48  ;;  %v982_v26 = vadd.f32 %v1384_v22, %v981_v25 }
 0x446   : > { %v896_v50 = vsel %vm893_vm3, %v895_v29, %v891_v49  ;;  %v1057_v29 = vld [vmem:[%s1905_s8 + $0x18] sm:$0xff] }
 0x447   : > { %v897_v51 = vmul.f32 %v1378_v36, %v896_v50  ;;  %v1790_v31 = vsel %vm983_vm4, %v1384_v22, %v982_v26  ;;  %1082 = vmatpush.msrb.mxu3 %v1057_v29 }
 0x449   : > { %1296 = vmatmul.msk.f32.vlgmr.msra.gmra.mxu0 %vm551_vm1, %v897_v51  ;;  %1295 = vst.msk [vmem:[%s1700_s20 + $0x18] sm:$0xff] %vm551_vm1, %v897_v51 }
 0x44d   : > { %v792_v52 = vpop.permute.xlu1 %791 }
 0x44e   : > { %812 = vmatpush.msra.mxu1 %v792_v52 }
 0x44f   : > { %1291 = vmatmul.msk.f32.vlgmr.msra.gmra.mxu1 %vm551_vm1, %v788_v30  ;;  %vm970_vm1 = vweird.f32 %v1382_v11  ;;  %v1023_v30 = vld [vmem:[%s1903_s6 + $0x8] sm:$0xff] }
 0x450   : > { %945 = vmatpush.msrb.mxu1 %v929_v53  ;;  %1047 = vmatpush.msrb.mxu2 %v1023_v30 }
 0x452   : > { %946 = vmatpush.msrb.mxu1 %v928_v54  ;;  %1048 = vmatpush.msrb.mxu2 %v1022_v32 }
 0x454   : > { %947 = vmatpush.msrb.mxu1 %v927_v56 }
 0x456   : > { %948 = vmatpush.msrb.mxu1 %v926_v57 }
 0x4ae   : > { %v710_v63 = vpop.f32.mrf.mxu2 }
 0x4af   : > { %v734_v0 = vadd.f32 %v1711_v12, %v710_v63  ;;  %v968_v12 = vmul.f32 %v1382_v11, %v967_v14 }
 0x4b1   : > { %v969_v15 = vadd.f32 %v1382_v11, %v968_v12 }
 0x4b3   : > { %v1773_v16 = vsel %vm970_vm1, %v1382_v11, %v969_v15 }
 0x4c6   : > { %v923_v61 = vpop.f32.mrf.mxu0 }
 0x4c7   : > { %1297 = vmatmul.msk.f32.vlgmr.msrb.gmra.mxu1 %vm460_vm0, %v923_v61 }
 0x4cc   : > { %v814_v62 = vpop.f32.mrf.mxu1 }
 0x4cd   : > { %1292 = vmatmul.msk.f32.vlgmr.msra.gmra.mxu2 %vm460_vm0, %v814_v62  ;;  %v1360_v62 = vld [vmem:[%s1902_s5] ss:$0 sm:$0xff] }
 0x544   : > { %v950_v4 = vpop.f32.mrf.mxu1 }
 0x550   : > { %v841_v1 = vpop.f32.mrf.mxu2 }
 0x551   : > { %v844_v2 = vadd.f32 %v841_v1, %v734_v0  ;;  %v1056_v1 = vld [vmem:[%s1905_s8 + $0x10] sm:$0xff] }
 0x552   : > { %1083 = vmatpush.msrb.mxu3 %v1056_v1 }
 0x553   : > { %v953_v5 = vadd.f32 %v950_v4, %v844_v2  ;;  %v1055_v2 = vld [vmem:[%s1905_s8 + $0x8] sm:$0xff]  ;;  %v1361_v4 = vld [vmem:[%s1904_s7] ss:$0 sm:$0xff] }
 0x554   : > { %1084 = vmatpush.msrb.mxu3 %v1055_v2 }
 0x555   : > { %v958_v6 = vadd.f32 %v1358_v3, %v953_v5  ;;  %v1054_v3 = vld [vmem:[%s1905_s8] sm:$0xff] }
 0x556   : > { %1085 = vmatpush.msrb.mxu3 %v1054_v3 }
 0x557   : > { %v959_v7 = vadd.f32 %v958_v6, %v1644_v8 }
 0x559   : > { %v962_v9 = vsel %vm460_vm0, %v959_v7, 0.0 }
 0x55a   : > { %963 = vadd.xlane.f32.xlu2 %v962_v9  ;;  %v1362_v9 = vld [vmem:[%s1906_s9] ss:$0 sm:$0xff] }
 0x5cd   : > { %v964_v17 = vpop.xlane.xlu2 %963 }
 0x5ce   : > { %v972_v18 = vmul.f32 %v1773_v16, %v964_v17 }
 0x5d0   : > { %v1776_v19 = vsub.f32 %v959_v7, %v972_v18 }
 0x5d2   : > { %v974_v8 = vmul.f32 %v1776_v19, %v1776_v19 }
 0x5d4   : > { %v975_v20 = vsel %vm460_vm0, %v974_v8, 0.0 }
 0x5d5   : > { %976 = vadd.xlane.f32.xlu0 %v975_v20 }
 0x648   : > { %v977_v33 = vpop.xlane.xlu0 %976 }
 0x649   : > { %v985_v34 = vmul.f32 %v1790_v31, %v977_v33 }
 0x64b   : > { %1385 = vrsqrt.f32 %v985_v34  ;;  %vm993_vm5 = vcmp.eq.f32.partialorder %v985_v34, inf  ;;  %v996_v45 = vand.u32 2147483648, %v985_v34  ;;  %vm995_vm6 = vcmp.eq.f32.partialorder %v985_v34, 0.0 }
 0x651   : > { %v1386_v35 = vpop.eup %1385 }
 0x652   : > { %v987_v36 = vmul.f32 %v1386_v35, %v985_v34 }
 0x654   : > { %v988_v37 = vmul.f32 %v1386_v35, %v987_v36 }
 0x656   : > { %v989_v38 = vmul.f32 0.5, %v988_v37 }
 0x658   : > { %v990_v39 = vsub.f32 1.5, %v989_v38 }
 0x65a   : > { %v991_v42 = vmul.f32 %v1386_v35, %v990_v39 }
 0x65c   : > { %v992_v44 = vmul.f32 %v991_v42, %v985_v34 }
 0x65e   : > { %v994_v47 = vsel %vm993_vm5, %v985_v34, %v992_v44 }
 0x65f   : > { %v997_v48 = vsel %vm995_vm6, %v996_v45, %v994_v47 }
 0x660   : > { %v998_v49 = vadd.f32 0.001, %v997_v48 }
 0x662   : > { %1387 = vrcp.f32 %v998_v49  ;;  %v1010_v53 = vand.u32 2147483648, %v998_v49  ;;  %v1008_v55 = vand.u32 2147483647, %v998_v49  ;;  %vm1004_vm8 = vweird.f32 %v998_v49 }
 0x664   : > { %v1011_v57 = vor.u32 1.1754944e-38, %v1010_v53  ;;  %vm1009_vm10 = vcmp.eq.f32.partialorder %v1008_v55, 8.507059e+37 }
 0x668   : > { %v1388_v50 = vpop.eup %1387 }
 0x669   : > { %v1000_v51 = vmul.f32 %v1388_v50, %v998_v49  ;;  %vm1005_vm7 = vweird.f32 %v1388_v50 }
 0x66a   : > { %vm1006_vm9 = vmor %vm1004_vm8, %vm1005_vm7 }
 0x66b   : > { %v1001_v52 = vsub.f32 1.0, %v1000_v51 }
 0x66d   : > { %v1002_v54 = vmul.f32 %v1388_v50, %v1001_v52 }
 0x66f   : > { %v1003_v56 = vadd.f32 %v1388_v50, %v1002_v54 }
 0x671   : > { %v1007_v58 = vsel %vm1006_vm9, %v1388_v50, %v1003_v56 }
 0x672   : > { %v1012_v60 = vsel %vm1009_vm10, %v1011_v57, %v1007_v58 }
 0x673   : > { %v1013_v61 = vmul.f32 %v1012_v60, %v1776_v19 }
 0x675   : > { %v1017_v63 = vmul.f32 %v1359_v59, %v1013_v61 }
 0x677   : > { %v1021_v0 = vadd.f32 %v1360_v62, %v1017_v63 }
 0x679   : > { %1298 = vmatmul.msk.f32.vlgmr.msrb.gmra.mxu2 %vm460_vm0, %v1021_v0 }
 0x6fc   : > { %v1050_v5 = vpop.f32.mrf.mxu2 }
 0x6fd   : > { %v1051_v6 = vadd.f32 %v1361_v4, %v1050_v5 }
 0x6ff   : > { %v1053_v7 = vmax.f32 %v1051_v6, 0.0 }
 0x701   : > { %1299 = vmatmul.msk.f32.vlgmr.msrb.gmra.mxu3 %vm1066_vm11, %v1053_v7 }
 0x784   : > { %v1087_v10 = vpop.f32.mrf.mxu3 }
 0x785   : > { %v1088_v11 = vadd.f32 %v1362_v9, %v1087_v10 }
 0x787   : > { %v1090_v13 = vadd.f32 %v1088_v11, %v1021_v0 }
 0x789   : > { %v1093_v14 = vsel %vm460_vm0, %v1090_v13, 0.0 }
 0x78a   : > { %1094 = vadd.xlane.f32.xlu1 %v1093_v14 }
 0x7fd   : > { %v1095_v12 = vpop.xlane.xlu1 %1094 }
 0x7fe   : > { %v1096_v15 = vmul.f32 %v1095_v12, %v1773_v16 }
 0x800   : > { %v1097_v17 = vsub.f32 %v1090_v13, %v1096_v15 }
 0x802   : > { %v1098_v18 = vmul.f32 %v1097_v17, %v1097_v17 }
 0x804   : > { %v1099_v19 = vsel %vm460_vm0, %v1098_v18, 0.0 }
 0x805   : > { %1100 = vadd.xlane.f32.xlu2 %v1099_v19 }
 0x806   : > { %1420 = shalt.err (!%p1417_p3)
}
 0x807   : > { %s1494_s20 = smov 128   ;;  %s1495_s16 = smov 256   ;;  %v1363_v41 = vld [vmem:[%s1907_s10] ss:$0 sm:$0xff] }
 0x808   : > { %s1496_s14 = smov 8   ;;  %s1273_s0 = sshll.u32 %s1695_s15, 3  ;;  %v1364_v44 = vld [vmem:[%s1908_s11] ss:$0 sm:$0xff] }
 0x809   : > { %1307 = dma.vmem_to_hbm [thread:$0]  (%p1605_p5), %s1172_s21, 512, %s1174_s22, %s1146_s23, %s1494_s20, %s1495_s16, %s1496_s14  }
 0x80a   : > { %s1156_s21 = scalar_lea.hbm %s1909_s12, %s1302_s27  ;;  %s435_s24 = scalar_lea.vmem [#allocation2], %s1273_s0 }
 0x80b   : > { %s1158_s30 = sshll.u32 %s435_s24, 4  ;;  %s1160_s17 = sshll.u32 %s1156_s21, 4  ;;  %s1159_s30 = int_to_ptr.vmem [resolvable:$true] %s1158_s30  ;;  %s1161_s17 = int_to_ptr.hbm [resolvable:$true] %s1160_s17 }
 0x80c   : > { %s1141_s29 = scalar_lea.sflag [#allocation3], %s1695_s15  ;;  %s1435_s20 = sshra.s32 %s1161_s17, 4  ;;  %s1436_s20 = int_to_ptr.hbm [resolvable:$true] %s1435_s20 }
 0x80d   : > { %s1437_s27 = scalar_lea.hbm %s1436_s20, 8  ;;  %s1441_s0 = scalar_lea.hbm %s1909_s12, 16 }
 0x80e   : > { %p1438_p4 = scmp.ne.s32.totalorder %s1436_s20, %s1437_s27  ;;  %p1442_p9 = scmp.lt.s32.totalorder %s1436_s20, %s1909_s12 }
 0x80f   : > { %p1443_p10 = scmp.lt.s32.totalorder %s1441_s0, %s1437_s27 }
 0x810   : > { %p1439_p7 = pnand %p1438_p4, %p1605_p5 }
 0x811   : > { %p1444_p11 = por %p1443_p10, %p1442_p9 }
 0x812   : > { %p1440_p8 = pneg %p1439_p7 }
 0x814   : > { %p1445_p12 = pnand %p1444_p11, %p1440_p8 }
 0x878   : > { %v1101_v16 = vpop.xlane.xlu2 %1100 }
 0x879   : > { %v1102_v8 = vmul.f32 %v1101_v16, %v1790_v31 }
 0x87b   : > { %1389 = vrsqrt.f32 %v1102_v8  ;;  %vm1110_vm12 = vcmp.eq.f32.partialorder %v1102_v8, inf  ;;  %v1113_v27 = vand.u32 2147483648, %v1102_v8  ;;  %vm1112_vm13 = vcmp.eq.f32.partialorder %v1102_v8, 0.0 }
 0x881   : > { %v1390_v20 = vpop.eup %1389 }
 0x882   : > { %v1104_v21 = vmul.f32 %v1390_v20, %v1102_v8 }
 0x884   : > { %v1105_v22 = vmul.f32 %v1390_v20, %v1104_v21 }
 0x886   : > { %v1106_v23 = vmul.f32 0.5, %v1105_v22 }
 0x888   : > { %v1107_v24 = vsub.f32 1.5, %v1106_v23 }
 0x88a   : > { %v1108_v25 = vmul.f32 %v1390_v20, %v1107_v24 }
 0x88c   : > { %v1109_v26 = vmul.f32 %v1108_v25, %v1102_v8 }
 0x88e   : > { %v1111_v28 = vsel %vm1110_vm12, %v1102_v8, %v1109_v26 }
 0x88f   : > { %v1114_v30 = vsel %vm1112_vm13, %v1113_v27, %v1111_v28 }
 0x890   : > { %v1115_v32 = vadd.f32 0.001, %v1114_v30 }
 0x892   : > { %1391 = vrcp.f32 %v1115_v32  ;;  %v1127_v35 = vand.u32 2147483648, %v1115_v32  ;;  %v1125_v37 = vand.u32 2147483647, %v1115_v32  ;;  %vm1121_vm15 = vweird.f32 %v1115_v32 }
 0x894   : > { %v1128_v39 = vor.u32 1.1754944e-38, %v1127_v35  ;;  %vm1126_vm3 = vcmp.eq.f32.partialorder %v1125_v37, 8.507059e+37 }
 0x898   : > { %v1392_v33 = vpop.eup %1391 }
 0x899   : > { %v1117_v34 = vmul.f32 %v1392_v33, %v1115_v32  ;;  %vm1122_vm14 = vweird.f32 %v1392_v33 }
 0x89a   : > { %vm1123_vm2 = vmor %vm1121_vm15, %vm1122_vm14 }
 0x89b   : > { %v1118_v31 = vsub.f32 1.0, %v1117_v34 }
 0x89d   : > { %v1119_v36 = vmul.f32 %v1392_v33, %v1118_v31 }
 0x89f   : > { %v1120_v38 = vadd.f32 %v1392_v33, %v1119_v36 }
 0x8a1   : > { %v1124_v40 = vsel %vm1123_vm2, %v1392_v33, %v1120_v38 }
 0x8a2   : > { %v1129_v42 = vsel %vm1126_vm3, %v1128_v39, %v1124_v40 }
 0x8a3   : > { %v1130_v43 = vmul.f32 %v1129_v42, %v1097_v17 }
 0x8a5   : > { %v1134_v45 = vmul.f32 %v1363_v41, %v1130_v43 }
 0x8a7   : > { %v1138_v46 = vadd.f32 %v1364_v44, %v1134_v45 }
 0x8a9   : > { %1139 = vst.msk [vmem:[%s435_s24] sm:$0xff] %vm460_vm0, %v1138_v46 }
 0x8aa   : > { %1448 = shalt.err (!%p1445_p12)
}
 0x8ab   : > { %1306 = dma.vmem_to_hbm [thread:$0]  (%p1605_p5), %s1159_s30, 128, %s1161_s17, %s1141_s29  }
 0x8ac PF: > { %p1317_p13 = scmp.ge.s32.totalorder %s1487_s28, 2  ;;  %s1188_s3 = sand.u32 1, %s1475_s25  }
 0x8ad   : > { %s1189_s19 = scalar_lea.sflag [#allocation3], %s1188_s3 }
 0x8ae   : > { %p1311_p0 = pnand %p1317_p13, %p1609_p6 }
 0x8b0   : > { %p1312_p1 = pneg %p1311_p0 }
 0x8b2   : > { %1466 = dma.done.wait (%p1312_p1), %s1189_s19, 128  }
 0x8b3   : > { %1468 = vsyncadd (%p1312_p1), %s1189_s19, 4294967168  ;;  %s1199_s21 = scalar_lea.sflag [#allocation5], %s1188_s3 }
 0x8b4   : > { %1470 = dma.done.wait (%p1312_p1), %s1199_s21, 512  }
 0x8b5   : > { %1472 = vsyncadd (%p1312_p1), %s1199_s21, 4294966784  ;;  %s1930_s28 = sld [smem:[#allocation9_spill]]  ;;  %s1933_s25 = smov %s1479_s26 }
 0x8b6   : > { %s1931_s22 = sld [smem:[#allocation8_spill]] }
 0x8b7   : > { %s1932_s27 = sld [smem:[#allocation10_spill]] }
 0x8bb   : > { %p27_p5 = scmp.ge.s32.totalorder %s1930_s28, 4  }
 0x8bc   : > { %s1934_s26 = smov %s1931_s22 }
 0x8bd   :  { %29 = sbr.rel (!%p27_p5) target bundleno = 10 (0xa), region = 123 }
 0x8c2   :  { %1205 = vsyncpa [#allocation3], 1 }
 0x8c3   :  { %1207 = vsyncpa [#allocation3 + $0x1], 1 }
 0x8c4   :  { %1208 = vsyncpa [#allocation5], 1 }
 0x8c5   :  { %1210 = vsyncpa [#allocation5 + $0x1], 1 }

</bundles_post_ra>
